<compile_context>
chip_gen: v6e
topology: v6e:2x2x1
jax: 0.10.0
libtpu: 0.0.40
codegen_flags: <defaults>
</compile_context>

<pallas_src>
import functools
import math

import jax
import jax.numpy as jnp
from jax.experimental import pallas as pl
from jax.experimental.pallas import tpu as pltpu


def _conv_bn_relu(x_ref, w_ref, b_ref, *, TH, KH, ph):
    """Shared body: returns (relu(conv*bn_scale + folded_bias), center_row)."""
    i = pl.program_id(1)
    h0 = pl.multiple_of(i * TH, TH)

    acc = None
    center = None
    for dh in range(KH):
        # Full padded row slab (TH, (W+KW-1)*C); dynamic sublane start, lane offset 0.
        row = x_ref[pl.ds(h0 + dh, TH), :]
        part = jnp.dot(row, w_ref[dh], preferred_element_type=jnp.float32)  # (TH, W*OP)
        acc = part if acc is None else acc + part
        if dh == ph:
            center = row

    y = jnp.maximum(acc + b_ref[...], 0.0)   # folded conv+BN bias, ReLU
    return y, center


def _kernel_residual(x_ref, w_ref, b_ref, s_ref, o_ref, *, TH, KH, ph):
    y, center = _conv_bn_relu(x_ref, w_ref, b_ref, TH=TH, KH=KH, ph=ph)
    # Residual add: scatter the resident center row from (u*C+c) layout into the
    # (v*OP+o) output layout with a 0/1 matmul on the MXU (no in-kernel relayout).
    y = y + jnp.dot(center, s_ref[...], preferred_element_type=jnp.float32)
    o_ref[...] = y.astype(o_ref.dtype)


def _kernel_plain(x_ref, w_ref, b_ref, o_ref, *, TH, KH, ph):
    y, _ = _conv_bn_relu(x_ref, w_ref, b_ref, TH=TH, KH=KH, ph=ph)
    o_ref[...] = y.astype(o_ref.dtype)


def conv_bn_act(x_nchw, conv_w, conv_b, gamma, beta, run_mean, run_var,
                eps=1e-5, skip=True, compute_dtype=jnp.float32,
                target_rows=1024):
    N, C, H, W = x_nchw.shape
    O, Cw, KH, KW = conv_w.shape
    assert Cw == C, "grouped conv not supported"
    assert KH % 2 == 1 and KW % 2 == 1, "only odd kernel sizes (SAME pad, stride 1)"
    ph, pw = (KH - 1) // 2, (KW - 1) // 2
    WP = W + KW - 1
    # timm guard: residual only when stride == 1 (always here) and in_chs == out_chs.
    has_residual = bool(skip) and (C == O)

    # ---- output-channel padding so the W*OP output lane dim is 128-dense ----
    step = 128 // math.gcd(W, 128)
    OP = ((O + step - 1) // step) * step
    if OP > 8 * O and OP > 8:      # avoid pathological padding; accept masked stores
        OP = O

    # ---- weight-side glue (one-time work on weights, not activations) ----
    scale = gamma / jnp.sqrt(run_var + eps)                       # (O,)
    bias = (conv_b - run_mean) * scale + beta                     # folded conv bias + BN
    wt = jnp.transpose(conv_w, (2, 3, 1, 0)) * scale              # (KH, KW, C, O)
    wt = jnp.pad(wt, ((0, 0), (0, 0), (0, 0), (0, OP - O)))       # (KH, KW, C, OP)
    # shift-selection tensor: sel[dw, u, v] = (u == v + dw)
    sel = (jnp.arange(WP)[None, :, None] ==
           (jnp.arange(W)[None, None, :] + jnp.arange(KW)[:, None, None])
           ).astype(wt.dtype)                                     # (KW, WP, W)
    # per-dh row weight: w2[dh, u*C+c, v*OP+o] = wt[dh, u-v, c, o] (0 outside window)
    w2 = jnp.einsum("duv,tdco->tucvo", sel, wt).reshape(KH, WP * C, W * OP)
    bias_bd = jnp.tile(jnp.pad(bias, (0, OP - O)), W).reshape(1, W * OP)

    # ---- activation glue: NCHW -> NHWC, SAME pad, flatten (W, C) into lanes ----
    x = jnp.transpose(x_nchw, (0, 2, 3, 1))
    xp = jnp.pad(x, ((0, 0), (ph, ph), (pw, pw), (0, 0)))
    x2d = xp.reshape(N, H + KH - 1, WP * C)

    # ---- row tiling: TH | H rows per grid step, ~target_rows output rows ----
    TH = H
    for th in range(H, 0, -1):
        if H % th == 0 and th * W <= target_rows and (th % 8 == 0 or th == H):
            TH = th
            break
    n_h = H // TH
    grid = (N, n_h)

    x2d = x2d.astype(compute_dtype)
    w2 = w2.astype(compute_dtype)
    bias_bd = bias_bd.astype(jnp.float32)

    in_specs = [
        # full padded image, resident across the H-tile axis (one HBM read per image)
        pl.BlockSpec((None, H + KH - 1, WP * C), lambda n, i: (n, 0, 0)),
        # per-dh row weights (resident)
        pl.BlockSpec((KH, WP * C, W * OP), lambda n, i: (0, 0, 0)),
        # folded conv+BN bias (resident)
        pl.BlockSpec((1, W * OP), lambda n, i: (0, 0)),
    ]
    args = [x2d, w2, bias_bd]

    if has_residual:
        # s2[u*C+c, v*OP+o] = (u == v + pw) * (c == o): identity scatter of the
        # center row into the output layout.
        s2 = jnp.einsum("uv,co->ucvo", sel[pw],
                        jnp.eye(C, OP, dtype=wt.dtype)).reshape(WP * C, W * OP)
        in_specs.append(pl.BlockSpec((WP * C, W * OP), lambda n, i: (0, 0)))
        args.append(s2.astype(compute_dtype))
        kernel = functools.partial(_kernel_residual, TH=TH, KH=KH, ph=ph)
    else:
        kernel = functools.partial(_kernel_plain, TH=TH, KH=KH, ph=ph)

    out2d = pl.pallas_call(
        kernel,
        out_shape=jax.ShapeDtypeStruct((N * H, W * OP), jnp.float32),
        grid_spec=pltpu.PrefetchScalarGridSpec(
            num_scalar_prefetch=0,
            grid=grid,
            in_specs=in_specs,
            out_specs=pl.BlockSpec((TH, W * OP), lambda n, i: (n * n_h + i, 0)),
        ),
        compiler_params=pltpu.CompilerParams(
            dimension_semantics=("parallel", "parallel")),
    )(*args)

    # ---- glue back: (N*H, W*OP) -> NCHW, drop the channel padding ----
    out = out2d.reshape(N, H, W, OP)[..., :O]
    return jnp.transpose(out, (0, 3, 1, 2))


def _reference(x_nchw, conv_w, conv_b, gamma, beta, run_mean, run_var,
               eps=1e-5, has_residual=True):
    y = jax.lax.conv_general_dilated(
        x_nchw, conv_w, window_strides=(1, 1), padding="SAME",
        dimension_numbers=("NCHW", "OIHW", "NCHW"))
    y = y + conv_b[None, :, None, None]
    scale = gamma / jnp.sqrt(run_var + eps)
    y = (y - run_mean[None, :, None, None]) * scale[None, :, None, None] \
        + beta[None, :, None, None]
    y = jnp.maximum(y, 0.0)
    if has_residual:
        y = y + x_nchw
    return y


if __name__ == "__main__":
    # ConvBnAct(in_chs=4, out_chs=4, kernel_size=3, stride=1, skip=True), eval mode
    N, C, H, W = 2, 4, 16, 16
    O, KH, KW = 4, 3, 3

    key = jax.random.PRNGKey(0)
    k_x, k_w, k_b, k_g, k_be, k_m, k_v = jax.random.split(key, 7)

    x = jax.random.normal(k_x, (N, C, H, W), jnp.float32)
    conv_w = jax.random.normal(k_w, (O, C, KH, KW), jnp.float32) * 0.1
    conv_b = jax.random.normal(k_b, (O,), jnp.float32) * 0.1
    gamma = 1.0 + 0.1 * jax.random.normal(k_g, (O,), jnp.float32)
    beta = 0.1 * jax.random.normal(k_be, (O,), jnp.float32)
    run_mean = 0.1 * jax.random.normal(k_m, (O,), jnp.float32)
    run_var = jnp.abs(1.0 + 0.1 * jax.random.normal(k_v, (O,), jnp.float32))

    out = conv_bn_act(x, conv_w, conv_b, gamma, beta, run_mean, run_var, skip=True)
    out = jax.block_until_ready(out)

    ref = _reference(x, conv_w, conv_b, gamma, beta, run_mean, run_var,
                     has_residual=True)
    assert out.shape == (N, O, H, W)
    assert jnp.allclose(out, ref, atol=1e-4, rtol=1e-4), \
        float(jnp.max(jnp.abs(out - ref)))

    print("KERNEL_OK")
</pallas_src>

<mosaic_0001>
module attributes {stable_mosaic.version = 11 : i64} {
  func.func @_kernel_residual(%arg0: i32, %arg1: i32, %arg2: memref<1x18x72xf32, #tpu.memory_space<vmem>>, %arg3: memref<3x72x128xf32, #tpu.memory_space<vmem>>, %arg4: memref<1x128xf32, #tpu.memory_space<vmem>>, %arg5: memref<72x128xf32, #tpu.memory_space<vmem>>, %arg6: memref<16x128xf32, #tpu.memory_space<vmem>>) attributes {dimension_semantics = [#tpu.dimension_semantics<parallel>, #tpu.dimension_semantics<parallel>], iteration_bounds = array<i64: 2, 1>, scalar_prefetch = 0 : i64, scratch_operands = 0 : i64, tpu.core_type = #tpu.core_type<tc>, window_params = [{transform_indices = @transform_0, window_bounds = array<i64: 1, 18, 72>}, {pipeline_mode = #tpu.pipeline_mode<synchronous>, transform_indices = @transform_1, window_bounds = array<i64: 3, 72, 128>}, {pipeline_mode = #tpu.pipeline_mode<synchronous>, transform_indices = @transform_2, window_bounds = array<i64: 1, 128>}, {pipeline_mode = #tpu.pipeline_mode<synchronous>, transform_indices = @transform_3, window_bounds = array<i64: 72, 128>}, {transform_indices = @transform_4, window_bounds = array<i64: 16, 128>}]} {
    %c16_i32 = arith.constant 16 : i32
    %0 = arith.muli %arg1, %c16_i32 : i32
    %1 = tpu.assume_multiple %0, 16 : i32
    %c0_i32 = arith.constant 0 : i32
    %2 = arith.addi %1, %c0_i32 : i32
    %c0 = arith.constant 0 : index
    %3 = arith.index_cast %2 : i32 to index
    %c0_0 = arith.constant 0 : index
    %4 = vector.load %arg2[%c0, %3, %c0_0] : memref<1x18x72xf32, #tpu.memory_space<vmem>>, vector<1x16x72xf32>
    %5 = vector.shape_cast %4 : vector<1x16x72xf32> to vector<16x72xf32>
    %c0_1 = arith.constant 0 : index
    %c0_2 = arith.constant 0 : index
    %c0_3 = arith.constant 0 : index
    %6 = vector.load %arg3[%c0_1, %c0_2, %c0_3] : memref<3x72x128xf32, #tpu.memory_space<vmem>>, vector<1x72x128xf32>
    %7 = vector.shape_cast %6 : vector<1x72x128xf32> to vector<72x128xf32>
    %cst = arith.constant dense<0.000000e+00> : vector<16x128xf32>
    %8 = tpu.matmul %5, %7, %cst {dimension_numbers = #tpu.dot_dimension_numbers<[1], [0], [0], [1], [0, 0, 1, 1], [], []>} : vector<16x72xf32>, vector<72x128xf32>, vector<16x128xf32> -> vector<16x128xf32>
    %c1_i32 = arith.constant 1 : i32
    %9 = arith.addi %1, %c1_i32 : i32
    %c0_4 = arith.constant 0 : index
    %10 = arith.index_cast %9 : i32 to index
    %c0_5 = arith.constant 0 : index
    %11 = vector.load %arg2[%c0_4, %10, %c0_5] : memref<1x18x72xf32, #tpu.memory_space<vmem>>, vector<1x16x72xf32>
    %12 = vector.shape_cast %11 : vector<1x16x72xf32> to vector<16x72xf32>
    %c1 = arith.constant 1 : index
    %c0_6 = arith.constant 0 : index
    %c0_7 = arith.constant 0 : index
    %13 = vector.load %arg3[%c1, %c0_6, %c0_7] : memref<3x72x128xf32, #tpu.memory_space<vmem>>, vector<1x72x128xf32>
    %14 = vector.shape_cast %13 : vector<1x72x128xf32> to vector<72x128xf32>
    %cst_8 = arith.constant dense<0.000000e+00> : vector<16x128xf32>
    %15 = tpu.matmul %12, %14, %cst_8 {dimension_numbers = #tpu.dot_dimension_numbers<[1], [0], [0], [1], [0, 0, 1, 1], [], []>} : vector<16x72xf32>, vector<72x128xf32>, vector<16x128xf32> -> vector<16x128xf32>
    %16 = arith.addf %8, %15 : vector<16x128xf32>
    %c2_i32 = arith.constant 2 : i32
    %17 = arith.addi %1, %c2_i32 : i32
    %c0_9 = arith.constant 0 : index
    %18 = arith.index_cast %17 : i32 to index
    %c0_10 = arith.constant 0 : index
    %19 = vector.load %arg2[%c0_9, %18, %c0_10] : memref<1x18x72xf32, #tpu.memory_space<vmem>>, vector<1x16x72xf32>
    %20 = vector.shape_cast %19 : vector<1x16x72xf32> to vector<16x72xf32>
    %c2 = arith.constant 2 : index
    %c0_11 = arith.constant 0 : index
    %c0_12 = arith.constant 0 : index
    %21 = vector.load %arg3[%c2, %c0_11, %c0_12] : memref<3x72x128xf32, #tpu.memory_space<vmem>>, vector<1x72x128xf32>
    %22 = vector.shape_cast %21 : vector<1x72x128xf32> to vector<72x128xf32>
    %cst_13 = arith.constant dense<0.000000e+00> : vector<16x128xf32>
    %23 = tpu.matmul %20, %22, %cst_13 {dimension_numbers = #tpu.dot_dimension_numbers<[1], [0], [0], [1], [0, 0, 1, 1], [], []>} : vector<16x72xf32>, vector<72x128xf32>, vector<16x128xf32> -> vector<16x128xf32>
    %24 = arith.addf %16, %23 : vector<16x128xf32>
    %c0_14 = arith.constant 0 : index
    %c0_15 = arith.constant 0 : index
    %25 = vector.load %arg4[%c0_14, %c0_15] : memref<1x128xf32, #tpu.memory_space<vmem>>, vector<1x128xf32>
    %26 = vector.broadcast %25 : vector<1x128xf32> to vector<16x128xf32>
    %27 = arith.addf %24, %26 : vector<16x128xf32>
    %cst_16 = arith.constant 0.000000e+00 : f32
    %28 = vector.broadcast %cst_16 : f32 to vector<16x128xf32>
    %29 = arith.maximumf %27, %28 : vector<16x128xf32>
    %c0_17 = arith.constant 0 : index
    %c0_18 = arith.constant 0 : index
    %30 = vector.load %arg5[%c0_17, %c0_18] : memref<72x128xf32, #tpu.memory_space<vmem>>, vector<72x128xf32>
    %cst_19 = arith.constant dense<0.000000e+00> : vector<16x128xf32>
    %31 = tpu.matmul %12, %30, %cst_19 {dimension_numbers = #tpu.dot_dimension_numbers<[1], [0], [0], [1], [0, 0, 1, 1], [], []>} : vector<16x72xf32>, vector<72x128xf32>, vector<16x128xf32> -> vector<16x128xf32>
    %32 = arith.addf %29, %31 : vector<16x128xf32>
    %c0_20 = arith.constant 0 : index
    %c0_21 = arith.constant 0 : index
    %33 = vector.load %arg6[%c0_20, %c0_21] : memref<16x128xf32, #tpu.memory_space<vmem>>, vector<16x128xf32>
    tpu.vector_store %arg6[%c0_20, %c0_21], %32 {strides = array<i32>} : memref<16x128xf32, #tpu.memory_space<vmem>>, vector<16x128xf32>,
    return
  }
  func.func @transform_0(%arg0: i32, %arg1: i32) -> (i32, i32, i32) {
    %c0_i32 = arith.constant 0 : i32
    %c0_i32_0 = arith.constant 0 : i32
    %c0_i32_1 = arith.constant 0 : i32
    return %arg0, %c0_i32, %c0_i32_0 : i32, i32, i32
  }
  func.func @transform_1(%arg0: i32, %arg1: i32) -> (i32, i32, i32) {
    %c0_i32 = arith.constant 0 : i32
    %c0_i32_0 = arith.constant 0 : i32
    %c0_i32_1 = arith.constant 0 : i32
    %c0_i32_2 = arith.constant 0 : i32
    return %c0_i32, %c0_i32_0, %c0_i32_1 : i32, i32, i32
  }
  func.func @transform_2(%arg0: i32, %arg1: i32) -> (i32, i32) {
    %c0_i32 = arith.constant 0 : i32
    %c0_i32_0 = arith.constant 0 : i32
    %c0_i32_1 = arith.constant 0 : i32
    return %c0_i32, %c0_i32_0 : i32, i32
  }
  func.func @transform_3(%arg0: i32, %arg1: i32) -> (i32, i32) {
    %c0_i32 = arith.constant 0 : i32
    %c0_i32_0 = arith.constant 0 : i32
    %c0_i32_1 = arith.constant 0 : i32
    return %c0_i32, %c0_i32_0 : i32, i32
  }
  func.func @transform_4(%arg0: i32, %arg1: i32) -> (i32, i32) {
    %c1_i32 = arith.constant 1 : i32
    %0 = arith.muli %arg0, %c1_i32 : i32
    %1 = arith.addi %0, %arg1 : i32
    %c0_i32 = arith.constant 0 : i32
    %c0_i32_0 = arith.constant 0 : i32
    return %1, %c0_i32 : i32, i32
  }
}

</mosaic_0001>

<bundles_post_ra>
// kernel: tpu_custom_call.1
= control target key start
LH: loop header
LB: loop body
LE: loop exit
PB: predicated region body
PF: predicated region fallthrough
CT: control target
= control target key end

     0   :  { %9 = vsyncpa [#allocation3], 0  ;;  %s1276_s0 = inlined_call_operand.vmem [shape: f32[2,18,72], index: 0, kind: input, shape index: {}]   ;;  %s1277_s1 = inlined_call_operand.hbm [shape: f32[3,72,128], index: 1, kind: input, shape index: {}]   ;;  %s1278_s2 = inlined_call_operand.vmem [shape: f32[1,128], index: 2, kind: input, shape index: {}]   ;;  %s1279_s3 = inlined_call_operand.vmem [shape: f32[72,128], index: 3, kind: input, shape index: {}]   ;;  %s1280_s4 = inlined_call_operand.hbm [shape: f32[32,128], index: 4, kind: output, shape index: {}]  }
   0x1   :  { %10 = vsyncpa [#allocation4], 0 }
   0x2   :  { %12 = vsyncpa [#allocation4 + $0x1], 0  ;;  %s1085_s15 = smov 0   ;;  %s1087_s16 = smov 0  }
   0x3   :  { %s1089_s17 = smov 0   ;;  %s1091_s18 = smov 0  }
   0x4   :  { %s1093_s19 = smov 0   ;;  %s1095_s20 = smov 0  }
   0x5 LB: > { %s719_s21 = sadd.s32 4294967295, %s1052_s20   ;;  %s720_s22 = sadd.s32 4294967294, %s1052_s20   ;;  %s1052_s20 = sphi %s1095_s20, %s18_s20   ;;  %s1048_s19 = sphi %s1093_s19, %s1289_s19   ;;  %s1044_s18 = sphi %s1091_s18, %s1288_s18   ;;  %s1040_s17 = sphi %s1089_s17, %s1287_s17   ;;  %s1036_s16 = sphi %s1087_s16, %s1286_s16   ;;  %s1032_s15 = sphi %s1085_s15, %s1285_s15  }
   0x6   : > { %s30_s23 = sadd.s32 1, %s1048_s19  ;;  %s128_s24 = sadd.s32 1, %s1040_s17 }
   0x7   : > { %p32_p0 = scmp.ge.s32.totalorder %s30_s23, 2  ;;  %p138_p1 = scmp.ne.s32.totalorder %s1040_s17, %s1036_s16 }
   0x8   : > { %p139_p2 = scmp.eq.s32.totalorder %s719_s21, 1  ;;  %p144_p3 = scmp.ne.s32.totalorder %s1036_s16, %s1032_s15 }
   0x9   : > { %s1291_s23 = smov (%p32_p0, %s30_s23), 0  ;;  %p145_p5 = scmp.eq.s32.totalorder %s720_s22, 1 }
   0xa   : > { %p1125_p4 = por %p139_p2, %p138_p1  ;;  %s125_s26 = ssub.s32 %s1048_s19, %s1291_s23 }
   0xb   : > { %p721_p6 = scmp.ge.s32.totalorder %s1052_s20, 1  ;;  %p126_p7 = scmp.eq.s32.totalorder %s125_s26, 0 }
   0xc   : > { %p1132_p8 = por %p145_p5, %p144_p3  ;;  %p152_p9 = scmp.lt.s32.totalorder %s1052_s20, 3 }
   0xd   : > { %s1138_s28 = scalar_select %p126_p7, %s1040_s17, %s128_s24  }
   0xe   : > { %p1140_p10 = pnand %p721_p6, %p152_p9  ;;  %p1144_p11 = scmp.eq.s32.totalorder %s719_s21, 0 }
   0xf   : > { %s1054_s5 = smov [#allocation2]  }
  0x10   : > { %p882_p12 = pneg %p1140_p10  ;;  %s164_s6 = sshll.u32 %s1054_s5, 4  ;;  %s165_s6 = int_to_ptr.vmem [resolvable:$true] %s164_s6 }
  0x11   : > { %s957_s7 = scalar_lea.vmem %s165_s6, 3456  ;;  %p965_p5 = scmp.lt.s32.totalorder %s165_s6, %s165_s6 }
  0x12   : > { %p883_p13 = pnand %p1144_p11, %p882_p12  ;;  %p958_p1 = scmp.ne.s32.totalorder %s165_s6, %s957_s7 }
  0x13   : > { %p966_p6 = scmp.lt.s32.totalorder %s957_s7, %s957_s7 }
  0x14   : > { %p948_p0 = pneg %p883_p13 }
  0x15   : > { %p967_p7 = por %p966_p6, %p965_p5 }
  0x16   : > { %p960_p2 = pnand %p958_p1, %p948_p0 }
  0x18   : > { %p961_p3 = pneg %p960_p2 }
  0x1a   : > { %p968_p9 = pnand %p967_p7, %p961_p3 }
  0x1c   : > { %971 = shalt.err (!%p968_p9)
}
  0x1d   : > { %s1055_s8 = smov 128   ;;  %s1056_s9 = smov 8  }
  0x1e   : > { %885 = dma.hbm_to_vmem [thread:$0]  (!%p883_p13), %s1277_s1, 3456, %s165_s6, [#allocation3], %s1055_s8, %s1055_s8, %s1056_s9  }
  0x1f   : > { %194 = sbr.rel (%p1140_p10) target bundleno = 293 (0x125), region = 36 }
  0x24   : > { %1023 = dma.done.wait (%p1144_p11), [#allocation3], 3456  }
  0x25   : > { %1025 = vsyncadd (%p1144_p11), [#allocation3], 4294963840  ;;  %v253_v0 = vld [vmem:[#allocation2 + $0x88] sm:$0xff]  ;;  %v239_v1 = vld [vmem:[#allocation2 + $0x40] sm:$0xff]  ;;  %p220_p12 = scmp.lt.s32.totalorder %s1044_s18, 1  ;;  %vm254_vm0 = vcmask 588800  }
  0x26   : > { %v252_v2 = vld [vmem:[#allocation2 + $0x80] sm:$0xff]  ;;  %791 = vmatprep.subr.mxu0 %v253_v0  ;;  %812 = vmatprep.subr.mxu1 %v239_v1  ;;  %v238_v3 = vld [vmem:[#allocation2 + $0x38] sm:$0xff]  ;;  %v237_v5 = vld [vmem:[#allocation2 + $0x30] sm:$0xff]  ;;  %s217_s30 = sand.u32 1, %s1036_s16   ;;  %s746_s9 = sshll.u32 %s1044_s18, 8 }
  0x27   : > { %792 = vmatpush3.msra.mxu0 %v253_v0  ;;  %813 = vmatpush3.msra.mxu1 %v239_v1  ;;  %v251_v4 = vld [vmem:[#allocation2 + $0x78] sm:$0xff]  ;;  %v250_v6 = vld [vmem:[#allocation2 + $0x70] sm:$0xff]  ;;  %v236_v7 = vld [vmem:[#allocation2 + $0x28] sm:$0xff]  ;;  %s221_s12 = scalar_select %p220_p12, %s1044_s18, 1 }
  0x28   : > { %793 = vmatprep.subr.mxu0 %v252_v2  ;;  %814 = vmatprep.subr.mxu1 %v238_v3  ;;  %v249_v8 = vld [vmem:[#allocation2 + $0x68] sm:$0xff]  ;;  %v235_v9 = vld [vmem:[#allocation2 + $0x20] sm:$0xff]  ;;  %v234_v11 = vld [vmem:[#allocation2 + $0x18] sm:$0xff]  ;;  %s1057_s18 = smov [#allocation5]  }
  0x29   : > { %794 = vmatpush3.msra.mxu0 %v252_v2  ;;  %815 = vmatpush3.msra.mxu1 %v238_v3  ;;  %v248_v10 = vld [vmem:[#allocation2 + $0x60] sm:$0xff]  ;;  %s875_s13 = smul.u32 24, %s221_s12  ;;  %v247_v12 = vld [vmem:[#allocation2 + $0x58] sm:$0xff]  ;;  %v233_v13 = vld [vmem:[#allocation2 + $0x10] sm:$0xff]  ;;  %s1229_s12 = scalar_lea.hbm %s1280_s4, %s746_s9 }
  0x2a   : > { %795 = vmatprep.subr.mxu0 %v251_v4  ;;  %816 = vmatprep.subr.mxu1 %v237_v5  ;;  %v246_v14 = vld [vmem:[#allocation2 + $0x50] sm:$0xff]  ;;  %v232_v15 = vld [vmem:[#allocation2 + $0x8] sm:$0xff]  ;;  %v231_v17 = vld [vmem:[#allocation2] sm:$0xff]  ;;  %s976_s21 = sshll.u32 %s1057_s18, 4  ;;  %s977_s21 = int_to_ptr.vmem [resolvable:$false] %s976_s21 }
  0x2b   : > { %796 = vmatpush3.msra.mxu0 %v251_v4  ;;  %817 = vmatpush3.msra.mxu1 %v237_v5  ;;  %s1168_s22 = scalar_lea.vmem %s1276_s0, %s875_s13  ;;  %v245_v16 = vld [vmem:[#allocation2 + $0x48] sm:$0xff]  ;;  %v430_v22 = vld [vmem:[#allocation2 + $0xd0] sm:$0xff]  ;;  %v533_v23 = vld [vmem:[%s1279_s3 + $0x40] sm:$0xff]  ;;  %s1231_s13 = scalar_lea.sflag [#allocation4], %s217_s30 }
  0x2c   : > { %797 = vmatprep.subr.mxu0 %v250_v6  ;;  %818 = vmatprep.subr.mxu1 %v236_v7  ;;  %v1171_v18 = vld [vmem:[%s1168_s22 + $0x1] sm:$0xff]  ;;  %v1175_v20 = vld [vmem:[%s1168_s22 + $0x9] sm:$0xff]  ;;  %v532_v25 = vld [vmem:[%s1279_s3 + $0x38] sm:$0xff]  ;;  %s978_s24 = scalar_lea.vmem %s977_s21, 512 }
  0x2d   : > { %798 = vmatpush3.msra.mxu0 %v250_v6  ;;  %819 = vmatpush3.msra.mxu1 %v236_v7  ;;  %v229_v19 = vld [vmem:[%s1168_s22] sm:$0xff]  ;;  %v230_v21 = vld [vmem:[%s1168_s22 + $0x8] sm:$0xff]  ;;  %v531_v27 = vld [vmem:[%s1279_s3 + $0x30] sm:$0xff] }
  0x2e   : > { %799 = vmatprep.subr.mxu0 %v249_v8  ;;  %820 = vmatprep.subr.mxu1 %v235_v9  ;;  %v429_v24 = vld [vmem:[#allocation2 + $0xc8] sm:$0xff]  ;;  %v428_v26 = vld [vmem:[#allocation2 + $0xc0] sm:$0xff]  ;;  %v427_v28 = vld [vmem:[#allocation2 + $0xb8] sm:$0xff] }
  0x2f   : > { %800 = vmatpush3.msra.mxu0 %v249_v8  ;;  %821 = vmatpush3.msra.mxu1 %v235_v9  ;;  %v530_v29 = vld [vmem:[%s1279_s3 + $0x28] sm:$0xff]  ;;  %v426_v30 = vld [vmem:[#allocation2 + $0xb0] sm:$0xff]  ;;  %v529_v31 = vld [vmem:[%s1279_s3 + $0x20] sm:$0xff] }
  0x30   : > { %801 = vmatprep.subr.mxu0 %v248_v10  ;;  %822 = vmatprep.subr.mxu1 %v234_v11  ;;  %v425_v32 = vld [vmem:[#allocation2 + $0xa8] sm:$0xff]  ;;  %v528_v33 = vld [vmem:[%s1279_s3 + $0x18] sm:$0xff]  ;;  %v424_v34 = vld [vmem:[#allocation2 + $0xa0] sm:$0xff] }
  0x31   : > { %802 = vmatpush3.msra.mxu0 %v248_v10  ;;  %823 = vmatpush3.msra.mxu1 %v234_v11  ;;  %v527_v35 = vld [vmem:[%s1279_s3 + $0x10] sm:$0xff]  ;;  %v734_v36 = vld [vmem:[%s1168_s22 + $0x2] sm:$0xff]  ;;  %v423_v37 = vld [vmem:[#allocation2 + $0x98] sm:$0xff] }
  0x32   : > { %803 = vmatprep.subr.mxu0 %v247_v12  ;;  %824 = vmatprep.subr.mxu1 %v233_v13  ;;  %v526_v38 = vld [vmem:[%s1279_s3 + $0x8] sm:$0xff]  ;;  %v422_v39 = vld [vmem:[#allocation2 + $0x90] sm:$0xff]  ;;  %v525_v40 = vld [vmem:[%s1279_s3] sm:$0xff] }
  0x33   : > { %804 = vmatpush3.msra.mxu0 %v247_v12  ;;  %825 = vmatpush3.msra.mxu1 %v233_v13  ;;  %v735_v41 = vld [vmem:[%s1168_s22 + $0xa] sm:$0xff]  ;;  %s726_s22 = sshll.u32 %s217_s30, 4  ;;  %v738_v48 = vld [vmem:[%s1278_s2] ss:$0 sm:$0xff] }
  0x34   : > { %805 = vmatprep.subr.mxu0 %v246_v14  ;;  %826 = vmatprep.subr.mxu1 %v232_v15  ;;  %s219_s7 = scalar_lea.vmem [#allocation5], %s726_s22 }
  0x35   : > { %806 = vmatpush3.msra.mxu0 %v246_v14  ;;  %827 = vmatpush3.msra.mxu1 %v232_v15  ;;  %s628_s8 = sshll.u32 %s219_s7, 4  ;;  %s1224_s8 = int_to_ptr.vmem [resolvable:$true] %s628_s8 }
  0x36   : > { %807 = vmatprep.subr.mxu0 %v245_v16  ;;  %828 = vmatprep.subr.mxu1 %v231_v17  ;;  %s972_s14 = scalar_lea.vmem %s1224_s8, 256  ;;  %p979_p0 = scmp.lt.s32.totalorder %s1224_s8, %s977_s21 }
  0x37   : > { %808 = vmatpush3.msra.mxu0 %v245_v16  ;;  %809 = vmatprep.mubr.msk.f32.mxu0 %vm254_vm0, %v1171_v18  ;;  %p973_p10 = scmp.ne.s32.totalorder %s1224_s8, %s972_s14  ;;  %p980_p1 = scmp.lt.s32.totalorder %s978_s24, %s972_s14 }
  0x38   : > { %829 = vmatpush3.msra.mxu1 %v231_v17  ;;  %830 = vmatprep.mubr.msk.f32.mxu1 %vm254_vm0, %v229_v19 }
  0x39   : > { %810 = vmatmul.mubr.msk.f32.vlgmr.msra.gmra.mxu0 %vm254_vm0, %v1175_v20  ;;  %831 = vmatmul.mubr.msk.f32.vlgmr.msra.gmra.mxu1 %vm254_vm0, %v230_v21  ;;  %p974_p11 = pnand %p973_p10, %p1125_p4  ;;  %p981_p2 = por %p980_p1, %p979_p0 }
  0x3a   : > { %833 = vmatprep.subr.mxu0 %v430_v22  ;;  %854 = vmatprep.subr.mxu1 %v533_v23 }
  0x3b   : > { %834 = vmatpush3.msra.mxu0 %v430_v22  ;;  %855 = vmatpush3.msra.mxu1 %v533_v23  ;;  %p975_p13 = pneg %p974_p11 }
  0x3c   : > { %835 = vmatprep.subr.mxu0 %v429_v24  ;;  %856 = vmatprep.subr.mxu1 %v532_v25 }
  0x3d   : > { %836 = vmatpush3.msra.mxu0 %v429_v24  ;;  %857 = vmatpush3.msra.mxu1 %v532_v25  ;;  %p982_p3 = pnand %p981_p2, %p975_p13 }
  0x3e   : > { %837 = vmatprep.subr.mxu0 %v428_v26  ;;  %858 = vmatprep.subr.mxu1 %v531_v27 }
  0x3f   : > { %838 = vmatpush3.msra.mxu0 %v428_v26  ;;  %859 = vmatpush3.msra.mxu1 %v531_v27 }
  0x40   : > { %839 = vmatprep.subr.mxu0 %v427_v28  ;;  %860 = vmatprep.subr.mxu1 %v530_v29 }
  0x41   : > { %840 = vmatpush3.msra.mxu0 %v427_v28  ;;  %861 = vmatpush3.msra.mxu1 %v530_v29 }
  0x42   : > { %841 = vmatprep.subr.mxu0 %v426_v30  ;;  %862 = vmatprep.subr.mxu1 %v529_v31 }
  0x43   : > { %842 = vmatpush3.msra.mxu0 %v426_v30  ;;  %863 = vmatpush3.msra.mxu1 %v529_v31 }
  0x44   : > { %843 = vmatprep.subr.mxu0 %v425_v32  ;;  %864 = vmatprep.subr.mxu1 %v528_v33 }
  0x45   : > { %844 = vmatpush3.msra.mxu0 %v425_v32  ;;  %865 = vmatpush3.msra.mxu1 %v528_v33 }
  0x46   : > { %845 = vmatprep.subr.mxu0 %v424_v34  ;;  %866 = vmatprep.subr.mxu1 %v527_v35 }
  0x47   : > { %846 = vmatpush3.msra.mxu0 %v424_v34  ;;  %851 = vmatprep.mubr.msk.f32.mxu0 %vm254_vm0, %v734_v36 }
  0x48   : > { %847 = vmatprep.subr.mxu0 %v423_v37  ;;  %867 = vmatpush3.msra.mxu1 %v527_v35 }
  0x49   : > { %848 = vmatpush3.msra.mxu0 %v423_v37  ;;  %868 = vmatprep.subr.mxu1 %v526_v38 }
  0x4a   : > { %849 = vmatprep.subr.mxu0 %v422_v39  ;;  %869 = vmatpush3.msra.mxu1 %v526_v38 }
  0x4b   : > { %850 = vmatpush3.msra.mxu0 %v422_v39  ;;  %870 = vmatprep.subr.mxu1 %v525_v40 }
  0x4c   : > { %852 = vmatmul.mubr.msk.f32.vlgmr.msra.gmra.mxu0 %vm254_vm0, %v735_v41  ;;  %871 = vmatpush3.msra.mxu1 %v525_v40 }
  0x4d   : > { %872 = vmatprep.mubr.msk.f32.mxu1 %vm254_vm0, %v1171_v18 }
  0x4e   : > { %873 = vmatmul.mubr.msk.f32.vlgmr.msra.gmra.mxu1 %vm254_vm0, %v1175_v20 }
  0xf9   : > { %v811_v42 = vpop.f32.mrf.mxu0  ;;  %v832_v43 = vpop.f32.mrf.mxu1 }
  0xfa   : > { %v414_v46 = vadd.f32 %v832_v43, %v811_v42 }
  0xfb   : > { %v327_v44 = vpop.f32.mrf.mxu0  ;;  %v408_v45 = vpop.f32.mrf.mxu1 }
  0xfc   : > { %v409_v49 = vadd.f32 %v408_v45, %v327_v44 }
 0x10c   : > { %v853_v47 = vpop.f32.mrf.mxu0 }
 0x10d   : > { %v513_v50 = vadd.f32 %v853_v47, %v414_v46 }
 0x10e   : > { %v503_v51 = vpop.f32.mrf.mxu0  ;;  %v874_v54 = vpop.f32.mrf.mxu1 }
 0x10f   : > { %v522_v52 = vadd.f32 %v738_v48, %v513_v50  ;;  %v512_v53 = vadd.f32 %v503_v51, %v409_v49 }
 0x110   : > { %v600_v59 = vpop.f32.mrf.mxu1 }
 0x111   : > { %v521_v55 = vadd.f32 %v738_v48, %v512_v53  ;;  %v524_v56 = vmax.f32 %v522_v52, 0.0 }
 0x113   : > { %v610_v57 = vadd.f32 %v874_v54, %v524_v56  ;;  %v523_v58 = vmax.f32 %v521_v55, 0.0 }
 0x115   : > { %612 = vst [vmem:[%s219_s7 + $0x8] sm:$0xff] %v610_v57  ;;  %v609_v60 = vadd.f32 %v600_v59, %v523_v58 }
 0x117   : > { %611 = vst [vmem:[%s219_s7] sm:$0xff] %v609_v60 }
 0x118   : > { %985 = shalt.err (!%p982_p3)
}
 0x119   : > { %s986_s26 = scalar_lea.hbm %s1229_s12, 256  ;;  %s990_s22 = scalar_lea.hbm %s1280_s4, 512 }
 0x11a   : > { %p987_p5 = scmp.ne.s32.totalorder %s1229_s12, %s986_s26  ;;  %p991_p9 = scmp.lt.s32.totalorder %s1229_s12, %s1280_s4 }
 0x11b   : > { %p992_p12 = scmp.lt.s32.totalorder %s990_s22, %s986_s26 }
 0x11c   : > { %p988_p6 = pnand %p987_p5, %p1125_p4 }
 0x11d   : > { %p993_p10 = por %p992_p12, %p991_p9 }
 0x11e   : > { %p989_p7 = pneg %p988_p6 }
 0x120   : > { %p994_p11 = pnand %p993_p10, %p989_p7 }
 0x122   : > { %997 = shalt.err (!%p994_p11)
}
 0x123   : > { %s1058_s7 = smov 128   ;;  %s1059_s9 = smov 8  }
 0x124   : > { %880 = dma.vmem_to_hbm [thread:$0]  (%p1125_p4), %s1224_s8, 256, %s1229_s12, %s1231_s13, %s1058_s7, %s1058_s7, %s1059_s9  }
 0x125 PF: > { %p892_p13 = scmp.ge.s32.totalorder %s1052_s20, 2  ;;  %s643_s10 = sand.u32 1, %s1032_s15  }
 0x126   : > { %s644_s11 = scalar_lea.sflag [#allocation4], %s643_s10 }
 0x127   : > { %p887_p0 = pnand %p892_p13, %p1132_p8 }
 0x129   : > { %p888_p1 = pneg %p887_p0 }
 0x12b   : > { %1027 = dma.done.wait (%p888_p1), %s644_s11, 256  }
 0x12c   : > { %1029 = vsyncadd (%p888_p1), %s644_s11, 4294967040  ;;  %s18_s20 = sadd.s32 1, %s1052_s20   ;;  %s1285_s15 = smov %s1036_s16 }
 0x12d   : > { %p15_p2 = scmp.ge.s32.totalorder %s18_s20, 4   ;;  %s1286_s16 = smov %s1040_s17 }
 0x12e   : > { %s1287_s17 = smov %s1138_s28  ;;  %s1288_s18 = smov %s1048_s19 }
 0x12f   : > { %s1289_s19 = smov %s1291_s23  ;;  %17 = sbr.rel (!%p15_p2) target bundleno = 5 (0x5), region = 81 }
 0x134   :  { %649 = vsyncpa [#allocation3], 1 }
 0x135   :  { %651 = vsyncpa [#allocation3 + $0x1], 1 }
 0x136   :  { %652 = vsyncpa [#allocation4], 1 }
 0x137   :  { %654 = vsyncpa [#allocation4 + $0x1], 1 }

</bundles_post_ra>
